<compile_context>
chip_gen: v6e
topology: v6e:2x2x1
jax: 0.10.0
libtpu: 0.0.40
codegen_flags: <defaults>
</compile_context>

<pallas_src>
import functools

import jax
import jax.numpy as jnp
from jax import lax
from jax.experimental import pallas as pl
from jax.experimental.pallas import tpu as pltpu


# ----------------------------------------------------------------------------
# Parameter preparation (done ONCE, outside the per-call path).
# ----------------------------------------------------------------------------
def prepare_indrnn_params(input_kernel, recurrent_kernel, bias, lane_pad=128):
    """input_kernel: (U, D_in); recurrent_kernel / bias: (U,).
    Returns lane-padded, pre-transposed parameters reused across calls."""
    U, D_in = input_kernel.shape
    U_pad = ((U + lane_pad - 1) // lane_pad) * lane_pad
    w_t = jnp.zeros((D_in, U_pad), jnp.float32)
    w_t = w_t.at[:, :U].set(jnp.asarray(input_kernel, jnp.float32).T)
    rb = jnp.zeros((2, U_pad), jnp.float32)                 # row 0 = rec, row 1 = bias
    rb = rb.at[0, :U].set(jnp.asarray(recurrent_kernel, jnp.float32))
    rb = rb.at[1, :U].set(jnp.asarray(bias, jnp.float32))
    return {"w_t": w_t, "rb": rb, "num_units": U, "num_units_padded": U_pad}


def _pad_hidden(h, B, U, U_pad):
    """Accept h of shape (U,) or (B, U); return (B, U_pad) f32 (padded lanes = 0)."""
    h = jnp.asarray(h, jnp.float32)
    h_b = jnp.broadcast_to(h.reshape(1, U) if h.ndim == 1 else h, (B, U))
    return jnp.zeros((B, U_pad), jnp.float32).at[:, :U].set(h_b)


# ----------------------------------------------------------------------------
# Single-step kernel (exact equivalent of one module.forward(x) call).
# ----------------------------------------------------------------------------
def _indrnn_step_kernel(x_ref, w_ref, rb_ref, h_ref, out_ref, *, rmax):
    rec = jnp.clip(rb_ref[0:1, :], -rmax, rmax)              # (1, U_pad)
    pre = jnp.dot(x_ref[...], w_ref[...], preferred_element_type=jnp.float32)
    out_ref[...] = jnp.maximum(pre + rb_ref[1:2, :] + rec * h_ref[...], 0.0)


def indrnn_forward(params, x, h, recurrent_max_abs):
    """One IndRNN step.  x: (B, D_in); h: (U,) or (B, U).  Returns (B, U) f32."""
    B, _ = x.shape
    U, U_pad = params["num_units"], params["num_units_padded"]
    h_pad = _pad_hidden(h, B, U, U_pad)
    # TODO(synk): rmax must be a static Python scalar (it is in the module).
    kernel = functools.partial(_indrnn_step_kernel, rmax=float(recurrent_max_abs))
    out = pl.pallas_call(
        kernel,
        out_shape=jax.ShapeDtypeStruct((B, U_pad), jnp.float32),
        in_specs=[pl.BlockSpec(memory_space=pltpu.MemorySpace.VMEM)] * 4,
        out_specs=pl.BlockSpec(memory_space=pltpu.MemorySpace.VMEM),
    )(x.astype(jnp.float32), params["w_t"], params["rb"], h_pad)
    return out[:, :U]


# ----------------------------------------------------------------------------
# Fused multi-timestep kernel: h_t = relu(x_t @ W^T + bias + rec * h_{t-1}).
# Single pallas_call, no grid: one matmul for all timesteps, pure-VPU carry.
# ----------------------------------------------------------------------------
def _indrnn_seq_kernel(x_ref, w_ref, rb_ref, h0_ref, out_ref, *, rmax, T, B):
    U_pad = w_ref.shape[1]
    # Loop-invariant terms: clip + broadcast ONCE (JAX doesn't CSE broadcasts).
    rec_b = jnp.broadcast_to(jnp.clip(rb_ref[0:1, :], -rmax, rmax), (B, U_pad))
    bias_b = jnp.broadcast_to(rb_ref[1:2, :], (B, U_pad))
    # Input projection for ALL timesteps in one MXU matmul (h-independent).
    pre = jnp.dot(x_ref[...], w_ref[...], preferred_element_type=jnp.float32)  # (T*B, U_pad)
    # Serial recurrence: ~3 VALU ops per step, fully unrolled (T small & static).
    h = h0_ref[...]                                          # (B, U_pad)
    for t in range(T):
        h = jnp.maximum(pre[t * B:(t + 1) * B, :] + bias_b + rec_b * h, 0.0)
        out_ref[t] = h


def indrnn_forward_sequence(params, x_seq, h0, recurrent_max_abs):
    """Fused IndRNN over time.  x_seq: (T, B, D_in); h0: (U,) or (B, U).
    Returns (T, B, U) f32 (== repeated forward() + set_hidden_state(output))."""
    T, B, D_in = x_seq.shape
    U, U_pad = params["num_units"], params["num_units_padded"]
    h0_pad = _pad_hidden(h0, B, U, U_pad)
    x_flat = x_seq.reshape(T * B, D_in).astype(jnp.float32)
    kernel = functools.partial(
        _indrnn_seq_kernel, rmax=float(recurrent_max_abs), T=T, B=B
    )
    out = pl.pallas_call(
        kernel,
        out_shape=jax.ShapeDtypeStruct((T, B, U_pad), jnp.float32),
        in_specs=[pl.BlockSpec(memory_space=pltpu.MemorySpace.VMEM)] * 4,
        out_specs=pl.BlockSpec(memory_space=pltpu.MemorySpace.VMEM),
    )(x_flat, params["w_t"], params["rb"], h0_pad)
    return out[:, :, :U]


# ----------------------------------------------------------------------------
# Pure-JAX references.
# ----------------------------------------------------------------------------
def indrnn_reference(x, input_kernel, recurrent_kernel, bias, h, rmax):
    rec = jnp.clip(recurrent_kernel, -rmax, rmax)
    return jnp.maximum(x @ input_kernel.T + bias + rec * h, 0.0)


def indrnn_sequence_reference(x_seq, input_kernel, recurrent_kernel, bias, h0, rmax):
    rec = jnp.clip(recurrent_kernel, -rmax, rmax)
    B = x_seq.shape[1]
    U = recurrent_kernel.shape[0]

    def step(h, x_t):
        h_new = jnp.maximum(x_t @ input_kernel.T + bias + rec * h, 0.0)
        return h_new, h_new

    h_init = jnp.broadcast_to(h0, (B, U))
    _, ys = lax.scan(step, h_init, x_seq)
    return ys


if __name__ == "__main__":
    # Module config: IndRNN(num_input_units=16, num_units=32)
    num_input_units = 16
    num_units = 32
    batch = 8
    seq_len = 12
    recurrent_max_abs = min(25.0, 1.0 / (num_units ** 0.5))

    key = jax.random.PRNGKey(0)
    k_x, k_xs, k_w, k_rec, k_h = jax.random.split(key, 5)

    x = jax.random.normal(k_x, (batch, num_input_units), dtype=jnp.float32)
    x_seq = jax.random.normal(
        k_xs, (seq_len, batch, num_input_units), dtype=jnp.float32
    )
    # __init__ uses zeros for input_kernel; random here so the matmul path is
    # actually exercised.
    input_kernel = (
        jax.random.normal(k_w, (num_units, num_input_units), dtype=jnp.float32) * 0.1
    )
    recurrent_kernel = jax.random.uniform(
        k_rec,
        (num_units,),
        minval=-recurrent_max_abs,
        maxval=recurrent_max_abs,
        dtype=jnp.float32,
    )
    bias = jnp.zeros((num_units,), dtype=jnp.float32)
    # Nonzero hidden state (as if set via set_hidden_state); reset_state() -> 0.
    h = jax.random.normal(k_h, (num_units,), dtype=jnp.float32)

    # One-time parameter prep (transpose / lane-pad / slab), reused across calls.
    params = prepare_indrnn_params(input_kernel, recurrent_kernel, bias)

    # --- single step (exact module.forward semantics) ---
    out = indrnn_forward(params, x, h, recurrent_max_abs)
    out = jax.block_until_ready(out)
    ref = indrnn_reference(
        x, input_kernel, recurrent_kernel, bias, h, recurrent_max_abs
    )
    assert out.shape == (batch, num_units)
    assert jnp.allclose(out, ref, atol=1e-5, rtol=1e-5), "step mismatch vs reference"

    # --- repeated forward() + set_hidden_state(output), per-batch (B, U) hidden ---
    h_state = h
    for t in range(3):
        h_state = indrnn_forward(params, x_seq[t], h_state, recurrent_max_abs)
    h_state = jax.block_until_ready(h_state)

    # --- fused time loop (same computation, one pallas_call) ---
    out_seq = indrnn_forward_sequence(params, x_seq, h, recurrent_max_abs)
    out_seq = jax.block_until_ready(out_seq)
    ref_seq = indrnn_sequence_reference(
        x_seq, input_kernel, recurrent_kernel, bias, h, recurrent_max_abs
    )
    assert out_seq.shape == (seq_len, batch, num_units)
    assert jnp.allclose(out_seq, ref_seq, atol=1e-5, rtol=1e-5), (
        "sequence mismatch vs reference"
    )
    assert jnp.allclose(h_state, ref_seq[2], atol=1e-5, rtol=1e-5), (
        "repeated-step hidden-state carry mismatch vs reference"
    )

    print("KERNEL_OK")
</pallas_src>

<mosaic_0001>
module attributes {stable_mosaic.version = 11 : i64} {
  func.func @_indrnn_step_kernel(%arg0: memref<8x16xf32, #tpu.memory_space<vmem>>, %arg1: memref<16x128xf32, #tpu.memory_space<vmem>>, %arg2: memref<2x128xf32, #tpu.memory_space<vmem>>, %arg3: memref<8x128xf32, #tpu.memory_space<vmem>>, %arg4: memref<8x128xf32, #tpu.memory_space<vmem>>) attributes {dimension_semantics = [], scalar_prefetch = 0 : i64, scratch_operands = 0 : i64, tpu.core_type = #tpu.core_type<tc>} {
    %c0 = arith.constant 0 : index
    %c0_0 = arith.constant 0 : index
    %0 = vector.load %arg2[%c0, %c0_0] : memref<2x128xf32, #tpu.memory_space<vmem>>, vector<1x128xf32>
    %cst = arith.constant -0.176776692 : f32
    %cst_1 = arith.constant 0.176776692 : f32
    %1 = vector.broadcast %cst : f32 to vector<1x128xf32>
    %2 = arith.maximumf %1, %0 : vector<1x128xf32>
    %3 = vector.broadcast %cst_1 : f32 to vector<1x128xf32>
    %4 = arith.minimumf %3, %2 : vector<1x128xf32>
    %c0_2 = arith.constant 0 : index
    %c0_3 = arith.constant 0 : index
    %5 = vector.load %arg0[%c0_2, %c0_3] : memref<8x16xf32, #tpu.memory_space<vmem>>, vector<8x16xf32>
    %c0_4 = arith.constant 0 : index
    %c0_5 = arith.constant 0 : index
    %6 = vector.load %arg1[%c0_4, %c0_5] : memref<16x128xf32, #tpu.memory_space<vmem>>, vector<16x128xf32>
    %cst_6 = arith.constant dense<0.000000e+00> : vector<8x128xf32>
    %7 = tpu.matmul %5, %6, %cst_6 {dimension_numbers = #tpu.dot_dimension_numbers<[1], [0], [0], [1], [0, 0, 1, 1], [], []>} : vector<8x16xf32>, vector<16x128xf32>, vector<8x128xf32> -> vector<8x128xf32>
    %c1 = arith.constant 1 : index
    %c0_7 = arith.constant 0 : index
    %8 = vector.load %arg2[%c1, %c0_7] : memref<2x128xf32, #tpu.memory_space<vmem>>, vector<1x128xf32>
    %9 = vector.broadcast %8 : vector<1x128xf32> to vector<8x128xf32>
    %10 = arith.addf %7, %9 : vector<8x128xf32>
    %c0_8 = arith.constant 0 : index
    %c0_9 = arith.constant 0 : index
    %11 = vector.load %arg3[%c0_8, %c0_9] : memref<8x128xf32, #tpu.memory_space<vmem>>, vector<8x128xf32>
    %12 = vector.broadcast %4 : vector<1x128xf32> to vector<8x128xf32>
    %13 = arith.mulf %12, %11 : vector<8x128xf32>
    %14 = arith.addf %10, %13 : vector<8x128xf32>
    %cst_10 = arith.constant 0.000000e+00 : f32
    %15 = vector.broadcast %cst_10 : f32 to vector<8x128xf32>
    %16 = arith.maximumf %14, %15 : vector<8x128xf32>
    %c0_11 = arith.constant 0 : index
    %c0_12 = arith.constant 0 : index
    %17 = vector.load %arg4[%c0_11, %c0_12] : memref<8x128xf32, #tpu.memory_space<vmem>>, vector<8x128xf32>
    tpu.vector_store %arg4[%c0_11, %c0_12], %16 {strides = array<i32>} : memref<8x128xf32, #tpu.memory_space<vmem>>, vector<8x128xf32>,
    return
  }
}

</mosaic_0001>

<bundles_post_ra>
// kernel: tpu_custom_call.1
= control target key start
LH: loop header
LB: loop body
LE: loop exit
PB: predicated region body
PF: predicated region fallthrough
CT: control target
= control target key end

     0   :  { %9 = vsyncpa [#allocation3], 0  ;;  %s323_s0 = inlined_call_operand.hbm [shape: f32[8,16], index: 0, kind: input, shape index: {}]   ;;  %s324_s1 = inlined_call_operand.hbm [shape: f32[16,128], index: 1, kind: input, shape index: {}]   ;;  %s325_s2 = inlined_call_operand.vmem [shape: f32[2,128], index: 2, kind: input, shape index: {}]   ;;  %s326_s3 = inlined_call_operand.hbm [shape: f32[8,128], index: 3, kind: input, shape index: {}]   ;;  %s327_s4 = inlined_call_operand.hbm [shape: f32[8,128], index: 4, kind: output, shape index: {}]  }
   0x1   :  { %10 = vsyncpa [#allocation6], 0 }
   0x2   :  { %11 = vsyncpa [#allocation4], 0  ;;  %s272_s15 = smov [#allocation5]  }
   0x3   :  { %s27_s16 = sshll.u32 %s272_s15, 4  ;;  %s28_s16 = int_to_ptr.vmem [resolvable:$true] %s27_s16 }
   0x4   :  { %s194_s17 = scalar_lea.vmem %s28_s16, 256  ;;  %p199_p1 = scmp.lt.s32.totalorder %s28_s16, %s28_s16 }
   0x5   :  { %p195_p0 = scmp.ne.s32.totalorder %s28_s16, %s194_s17  ;;  %p200_p2 = scmp.lt.s32.totalorder %s194_s17, %s194_s17 }
   0x7   :  { %p201_p3 = por %p200_p2, %p199_p1 }
   0x9   :  { %p202_p4 = pnand %p201_p3, %p195_p0 }
   0xb   :  { %205 = shalt.err (!%p202_p4)
}
   0xc   :  { %s273_s18 = smov 128   ;;  %s274_s19 = smov 8  }
   0xd   :  { %33 = dma.hbm_to_vmem [thread:$0]  %s324_s1, 256, %s28_s16, [#allocation6], %s273_s18, %s273_s18, %s274_s19  }
   0xe   :  { %s275_s22 = smov [#allocation2]   ;;  %s276_s24 = smov [#allocation7]  }
   0xf   :  { %s18_s23 = sshll.u32 %s275_s22, 4  ;;  %s42_s25 = sshll.u32 %s276_s24, 4  ;;  %s19_s23 = int_to_ptr.vmem [resolvable:$true] %s18_s23  ;;  %s43_s25 = int_to_ptr.vmem [resolvable:$true] %s42_s25 }
  0x10   :  { %s214_s26 = scalar_lea.vmem %s19_s23, 128  ;;  %p219_p6 = scmp.lt.s32.totalorder %s19_s23, %s19_s23 }
  0x11   :  { %p215_p5 = scmp.ne.s32.totalorder %s19_s23, %s214_s26  ;;  %p220_p7 = scmp.lt.s32.totalorder %s214_s26, %s214_s26 }
  0x13   :  { %p221_p8 = por %p220_p7, %p219_p6 }
  0x15   :  { %p222_p9 = pnand %p221_p8, %p215_p5 }
  0x17   :  { %225 = shalt.err (!%p222_p9)
}
  0x18   :  { %21 = dma.hbm_to_vmem [thread:$0]  %s323_s0, 128, %s19_s23, [#allocation3]  }
  0x19   :  { %s234_s29 = scalar_lea.vmem %s43_s25, 128  ;;  %p239_p11 = scmp.lt.s32.totalorder %s43_s25, %s43_s25 }
  0x1a   :  { %p235_p10 = scmp.ne.s32.totalorder %s43_s25, %s234_s29  ;;  %p240_p12 = scmp.lt.s32.totalorder %s234_s29, %s234_s29 }
  0x1c   :  { %p241_p13 = por %p240_p12, %p239_p11 }
  0x1e   :  { %p242_p0 = pnand %p241_p13, %p235_p10 }
  0x20   :  { %245 = shalt.err (!%p242_p0)
}
  0x21   :  { %45 = dma.hbm_to_vmem [thread:$0]  %s326_s3, 128, %s43_s25, [#allocation6]  }
  0x22   :  { %266 = dma.done.wait [#allocation3], 128  }
  0x23   :  { %267 = vsyncadd [#allocation3], 4294967168 }
  0x24   :  { %268 = dma.done.wait [#allocation6], 384  }
  0x25   :  { %269 = vsyncadd [#allocation6], 4294966912  ;;  %v277_v0 = vmov 0.0   ;;  %vm278_vm0 = vmmov 0   ;;  %v60_v1 = vld [vmem:[#allocation5 + $0x8] sm:$0xff]  ;;  %v59_v2 = vld [vmem:[#allocation5] sm:$0xff]  ;;  %v141_v4 = vlaneseq }
  0x26   :  { %171 = vmatprep.subr.mxu0 %v277_v0  ;;  %175 = vmatprep.mubr.msk.f32.mxu0 %vm278_vm0, %v277_v0  ;;  %v58_v3 = vld [vmem:[#allocation2] sm:$0xff]  ;;  %vm66_vm1 = vcmask 130048   ;;  %v140_v10 = vld [vmem:[#allocation7] sm:$0xff]  ;;  %s279_s7 = smov [#allocation8]  }
  0x27   :  { %172 = vmatpush3.msra.mxu0 %v60_v1  ;;  %v142_v5 = vshrl.u32 %v141_v4, 7  ;;  %v55_v6 = vld [vmem:[%s325_s2] sm:$0x1]  ;;  %v166_v11 = vld [vmem:[%s325_s2 + $0x1] ss:$0 sm:$0xff]  ;;  %s155_s8 = sshll.u32 %s279_s7, 4  ;;  %s156_s8 = int_to_ptr.vmem [resolvable:$true] %s155_s8 }
  0x28   :  { %173 = vmatprep.subr.mxu0 %v277_v0  ;;  %v165_v7 = vclamps-f32 %v55_v6, 0.17677669  ;;  %s246_s9 = scalar_lea.vmem %s156_s8, 128  ;;  %p251_p2 = scmp.lt.s32.totalorder %s156_s8, %s156_s8 }
  0x29   :  { %174 = vmatpush3.msra.mxu0 %v59_v2  ;;  %v143_v8 = vsub.s32 0, %v142_v5  ;;  %p247_p1 = scmp.ne.s32.totalorder %s156_s8, %s246_s9  ;;  %p252_p3 = scmp.lt.s32.totalorder %s246_s9, %s246_s9 }
  0x2a   :  { %176 = vmatmul.mubr.msk.f32.vlgmr.msra.gmra.mxu0 %vm66_vm1, %v58_v3 }
  0x2b   :  { %v144_v9 = vrot.slane %v165_v7, %v143_v8  ;;  %p253_p4 = por %p252_p3, %p251_p2 }
  0x2d   :  { %v145_v12 = vmul.f32 %v144_v9, %v140_v10  ;;  %p254_p5 = pnand %p253_p4, %p247_p1 }
  0xea   :  { %v136_v13 = vpop.f32.mrf.mxu0 }
  0xeb   :  { %v137_v14 = vadd.f32 %v166_v11, %v136_v13 }
  0xec   :  { %v177_v15 = vpop.f32.mrf.mxu0 }
  0xed   :  { %v146_v16 = vadd.f32 %v145_v12, %v137_v14 }
  0xef   :  { %v147_v17 = vmax.f32 %v146_v16, 0.0 }
  0xf1   :  { %148 = vst [vmem:[#allocation8] sm:$0xff] %v147_v17 }
  0xf2   :  { %257 = shalt.err (!%p254_p5)
}
  0xf3   :  { %158 = dma.vmem_to_hbm [thread:$0]  %s156_s8, 128, %s327_s4, [#allocation4]  }
  0xf4   :  { %270 = dma.done.wait [#allocation4], 128  }
  0xf5   :  { %271 = vsyncadd [#allocation4], 4294967168 }
  0xf6   :  { %162 = vsyncpa [#allocation3], 1 }
  0xf7   :  { %163 = vsyncpa [#allocation6], 1 }
  0xf8   :  { %164 = vsyncpa [#allocation4], 1 }

</bundles_post_ra>
